<compile_context>
chip_gen: v5e
topology: v5e:2x2
jax: 0.10.0
libtpu: 0.0.40
codegen_flags: <defaults>
</compile_context>

<pallas_src>
import functools

import jax
import jax.numpy as jnp
from jax.experimental import pallas as pl
from jax.experimental.pallas import tpu as pltpu

_LANE = 128                       # TPU lane width
_TILE_X_BYTES = 2 * 1024 * 1024   # ~2 MiB of x per pipelined tile


# ---------------------------------------------------------------------------
# Kernel: out = (x * a + b) * mask          (a, b are per-channel (C,1))
# ---------------------------------------------------------------------------
def _affine_mask_kernel(a_ref, b_ref, x_ref, mask_ref, o_ref):
    # a_ref, b_ref : (C, 1)   -- broadcast over time lanes
    # x_ref, o_ref : (C, TT)  -- channels on sublanes, time on lanes
    # mask_ref     : (1, TT)  -- broadcast over channels
    o_ref[...] = (
        (x_ref[...] * a_ref[...] + b_ref[...]) * mask_ref[...]
    ).astype(o_ref.dtype)


def _pick_time_tile(T, C, B, itemsize):
    """128-aligned time tile sized from a VMEM byte budget (no pad needed)."""
    total_blocks = -(-T // _LANE)                 # 128-lane groups covering T
    # ~2 MiB of x per tile; with out + mask, double-buffered, stays well
    # below the 32 MiB scoped-VMEM ceiling on v5e/v6e/v7x.
    tt_blocks = max(1, _TILE_X_BYTES // (C * itemsize * _LANE))
    tt_blocks = min(tt_blocks, total_blocks)
    # Keep >= 2 grid programs so both v7x TensorCores get work when B is tiny.
    min_programs = 2
    if B * (-(-total_blocks // tt_blocks)) < min_programs:
        need_tiles = -(-min_programs // B)
        if total_blocks >= need_tiles:
            tt_blocks = total_blocks // need_tiles
    return tt_blocks * _LANE


def _affine_mask(x, x_mask, a, b):
    """Apply (x * a + b) * mask with a tiled, lane-dense Pallas kernel."""
    B, C, T = x.shape
    TT = _pick_time_tile(T, C, B, x.dtype.itemsize)
    grid = (B, pl.cdiv(T, TT))                    # ragged last tile is fine

    return pl.pallas_call(
        _affine_mask_kernel,
        out_shape=jax.ShapeDtypeStruct((B, C, T), x.dtype),
        grid_spec=pltpu.PrefetchScalarGridSpec(
            num_scalar_prefetch=0,
            grid=grid,
            in_specs=[
                pl.BlockSpec((C, 1), lambda bi, ti: (0, 0)),            # a
                pl.BlockSpec((C, 1), lambda bi, ti: (0, 0)),            # b
                pl.BlockSpec((pl.Squeezed(), C, TT),
                             lambda bi, ti: (bi, 0, ti)),               # x
                pl.BlockSpec((pl.Squeezed(), 1, TT),
                             lambda bi, ti: (bi, 0, ti)),               # mask
            ],
            out_specs=pl.BlockSpec((pl.Squeezed(), C, TT),
                                   lambda bi, ti: (bi, 0, ti)),
        ),
        compiler_params=pltpu.CompilerParams(
            # Both axes independent -> shard across v7x's two TensorCores.
            dimension_semantics=("parallel", "parallel"),
            # Above v5e's 16 MiB default scope, below v7x's 64 MiB physical.
            vmem_limit_bytes=32 * 1024 * 1024,
        ),
    )(a, b, x, x_mask)


# ---------------------------------------------------------------------------
# Public wrapper (matches ElementwiseAffine.forward semantics)
# ---------------------------------------------------------------------------
@functools.partial(jax.jit, static_argnames=("reverse",))
def elementwise_affine(x, x_mask, m, logs, *, reverse=False):
    """Pallas implementation of ElementwiseAffine.forward.

    Args:
      x:      [B, C, T]
      x_mask: [B, 1, T]
      m:      [C, 1]
      logs:   [C, 1]
    Returns:
      forward: (y [B, C, T], logdet [B])
      reverse: x_out [B, C, T]
    """
    x_mask_c = x_mask.astype(x.dtype)            # no-op if dtypes already match
    if not reverse:
        a = jnp.exp(logs).astype(x.dtype)        # hoisted, computed once
        b = m.astype(x.dtype)
        y = _affine_mask(x, x_mask_c, a, b)      # (m + exp(logs)*x) * mask
        # logdet_b = sum_{c,t} logs[c] * mask[b,0,t]
        #          = sum_c logs[c] * sum_t mask[b,0,t]   (exact, in f32)
        logdet = jnp.sum(logs.astype(jnp.float32)) * jnp.sum(
            x_mask.astype(jnp.float32), axis=(1, 2))
        return y, logdet
    else:
        inv = jnp.exp(-logs)                     # hoisted, computed once
        a = inv.astype(x.dtype)
        b = (-m * inv).astype(x.dtype)           # (x - m)*exp(-logs) == x*a + b
        return _affine_mask(x, x_mask_c, a, b)


# ---------------------------------------------------------------------------
# Pure-JAX reference (mirrors the PyTorch module)
# ---------------------------------------------------------------------------
def _reference(x, x_mask, m, logs, reverse=False):
    if not reverse:
        y = (m[None] + jnp.exp(logs)[None] * x) * x_mask
        logdet = jnp.sum(logs[None] * x_mask, axis=(1, 2))
        return y, logdet
    else:
        return (x - m[None]) * jnp.exp(-logs)[None] * x_mask


# ---------------------------------------------------------------------------
if __name__ == "__main__":
    B, C, T = 2, 4, 16

    key = jax.random.PRNGKey(0)
    kx, km, kl = jax.random.split(key, 3)

    x = jax.random.normal(kx, (B, C, T), dtype=jnp.float32)

    # Ragged time mask (like VITS sequence masks): lengths = [16, 10]
    lengths = jnp.array([T, 10], dtype=jnp.int32)
    x_mask = (jnp.arange(T)[None, :] < lengths[:, None]).astype(jnp.float32)
    x_mask = x_mask[:, None, :]  # [B, 1, T]

    # Parameters: module init is zeros(channels, 1); use small deterministic
    # random values here so the affine math is actually exercised.
    m = 0.1 * jax.random.normal(km, (C, 1), dtype=jnp.float32)
    logs = 0.1 * jax.random.normal(kl, (C, 1), dtype=jnp.float32)

    # Forward
    y, logdet = elementwise_affine(x, x_mask, m, logs, reverse=False)
    jax.block_until_ready((y, logdet))
    y_ref, logdet_ref = _reference(x, x_mask, m, logs, reverse=False)
    assert jnp.allclose(y, y_ref, atol=1e-5, rtol=1e-5), "forward y mismatch"
    assert jnp.allclose(logdet, logdet_ref, atol=1e-5, rtol=1e-5), "logdet mismatch"

    # Reverse (should invert forward on masked positions)
    x_rec = elementwise_affine(y, x_mask, m, logs, reverse=True)
    jax.block_until_ready(x_rec)
    x_rec_ref = _reference(y, x_mask, m, logs, reverse=True)
    assert jnp.allclose(x_rec, x_rec_ref, atol=1e-5, rtol=1e-5), "reverse mismatch"
    assert jnp.allclose(x_rec, x * x_mask, atol=1e-5, rtol=1e-5), "inverse check failed"

    print("KERNEL_OK")
</pallas_src>

<mosaic_0001>
module attributes {stable_mosaic.version = 11 : i64} {
  func.func @_affine_mask_kernel(%arg0: i32, %arg1: i32, %arg2: memref<4x1xf32, #tpu.memory_space<vmem>>, %arg3: memref<4x1xf32, #tpu.memory_space<vmem>>, %arg4: memref<1x4x128xf32, #tpu.memory_space<vmem>>, %arg5: memref<1x1x128xf32, #tpu.memory_space<vmem>>, %arg6: memref<1x4x128xf32, #tpu.memory_space<vmem>>) attributes {dimension_semantics = [#tpu.dimension_semantics<parallel>, #tpu.dimension_semantics<parallel>], iteration_bounds = array<i64: 2, 1>, scalar_prefetch = 0 : i64, scratch_operands = 0 : i64, tpu.core_type = #tpu.core_type<tc>, window_params = [{pipeline_mode = #tpu.pipeline_mode<synchronous>, transform_indices = @transform_0, window_bounds = array<i64: 4, 1>}, {pipeline_mode = #tpu.pipeline_mode<synchronous>, transform_indices = @transform_1, window_bounds = array<i64: 4, 1>}, {transform_indices = @transform_2, window_bounds = array<i64: 1, 4, 128>}, {transform_indices = @transform_3, window_bounds = array<i64: 1, 1, 128>}, {transform_indices = @transform_4, window_bounds = array<i64: 1, 4, 128>}]} {
    %c0 = arith.constant 0 : index
    %c0_0 = arith.constant 0 : index
    %c0_1 = arith.constant 0 : index
    %0 = vector.load %arg4[%c0, %c0_0, %c0_1] : memref<1x4x128xf32, #tpu.memory_space<vmem>>, vector<1x4x128xf32>
    %1 = vector.shape_cast %0 : vector<1x4x128xf32> to vector<4x128xf32>
    %c0_2 = arith.constant 0 : index
    %c0_3 = arith.constant 0 : index
    %2 = vector.load %arg2[%c0_2, %c0_3] : memref<4x1xf32, #tpu.memory_space<vmem>>, vector<4x1xf32>
    %3 = vector.broadcast %2 : vector<4x1xf32> to vector<4x128xf32>
    %4 = arith.mulf %1, %3 : vector<4x128xf32>
    %c0_4 = arith.constant 0 : index
    %c0_5 = arith.constant 0 : index
    %5 = vector.load %arg3[%c0_4, %c0_5] : memref<4x1xf32, #tpu.memory_space<vmem>>, vector<4x1xf32>
    %6 = vector.broadcast %5 : vector<4x1xf32> to vector<4x128xf32>
    %7 = arith.addf %4, %6 : vector<4x128xf32>
    %c0_6 = arith.constant 0 : index
    %c0_7 = arith.constant 0 : index
    %c0_8 = arith.constant 0 : index
    %8 = vector.load %arg5[%c0_6, %c0_7, %c0_8] : memref<1x1x128xf32, #tpu.memory_space<vmem>>, vector<1x1x128xf32>
    %9 = vector.shape_cast %8 : vector<1x1x128xf32> to vector<1x128xf32>
    %10 = vector.broadcast %9 : vector<1x128xf32> to vector<4x128xf32>
    %11 = arith.mulf %7, %10 : vector<4x128xf32>
    %c0_9 = arith.constant 0 : index
    %c0_10 = arith.constant 0 : index
    %c0_11 = arith.constant 0 : index
    %12 = vector.load %arg6[%c0_9, %c0_10, %c0_11] : memref<1x4x128xf32, #tpu.memory_space<vmem>>, vector<1x4x128xf32>
    %13 = vector.shape_cast %12 : vector<1x4x128xf32> to vector<4x128xf32>
    %14 = vector.shape_cast %11 : vector<4x128xf32> to vector<1x4x128xf32>
    tpu.vector_store %arg6[%c0_9, %c0_10, %c0_11], %14 {strides = array<i32>} : memref<1x4x128xf32, #tpu.memory_space<vmem>>, vector<1x4x128xf32>,
    return
  }
  func.func @transform_0(%arg0: i32, %arg1: i32) -> (i32, i32) {
    %c0_i32 = arith.constant 0 : i32
    %c0_i32_0 = arith.constant 0 : i32
    %c0_i32_1 = arith.constant 0 : i32
    return %c0_i32, %c0_i32_0 : i32, i32
  }
  func.func @transform_1(%arg0: i32, %arg1: i32) -> (i32, i32) {
    %c0_i32 = arith.constant 0 : i32
    %c0_i32_0 = arith.constant 0 : i32
    %c0_i32_1 = arith.constant 0 : i32
    return %c0_i32, %c0_i32_0 : i32, i32
  }
  func.func @transform_2(%arg0: i32, %arg1: i32) -> (i32, i32, i32) {
    %c0_i32 = arith.constant 0 : i32
    %c0_i32_0 = arith.constant 0 : i32
    return %arg0, %c0_i32, %arg1 : i32, i32, i32
  }
  func.func @transform_3(%arg0: i32, %arg1: i32) -> (i32, i32, i32) {
    %c0_i32 = arith.constant 0 : i32
    %c0_i32_0 = arith.constant 0 : i32
    return %arg0, %c0_i32, %arg1 : i32, i32, i32
  }
  func.func @transform_4(%arg0: i32, %arg1: i32) -> (i32, i32, i32) {
    %c0_i32 = arith.constant 0 : i32
    %c0_i32_0 = arith.constant 0 : i32
    return %arg0, %c0_i32, %arg1 : i32, i32, i32
  }
}

</mosaic_0001>

<bundles_post_ra>
// kernel: elementwise_affine.1
= control target key start
LH: loop header
LB: loop body
LE: loop exit
PB: predicated region body
PF: predicated region fallthrough
CT: control target
= control target key end

     0   :  { %9 = vsyncpa [#allocation3], 0  ;;  %s645_s0 = inlined_call_operand.vmem [shape: f32[4,1], index: 0, kind: input, shape index: {}]   ;;  %s646_s1 = inlined_call_operand.vmem [shape: f32[4,1], index: 1, kind: input, shape index: {}]   ;;  %s647_s2 = inlined_call_operand.vmem [shape: f32[2,4,16], index: 2, kind: input, shape index: {}]   ;;  %s648_s3 = inlined_call_operand.vmem [shape: f32[2,1,16], index: 3, kind: input, shape index: {}]   ;;  %s649_s4 = inlined_call_operand.hbm [shape: f32[2,4,16], index: 4, kind: output, shape index: {}]  }
   0x1   :  { %11 = vsyncpa [#allocation3 + $0x1], 0  ;;  %s539_s15 = smov 0   ;;  %s541_s16 = smov 0  }
   0x2   :  { %s543_s17 = smov 0   ;;  %s545_s18 = smov 0  }
   0x3   :  { %s547_s19 = smov 0   ;;  %s549_s20 = smov 0  }
   0x4 LB: > { %s364_s21 = sadd.s32 4294967295, %s511_s20   ;;  %s365_s22 = sadd.s32 4294967294, %s511_s20   ;;  %s511_s20 = sphi %s549_s20, %s17_s20   ;;  %s507_s19 = sphi %s547_s19, %s656_s19   ;;  %s503_s18 = sphi %s545_s18, %s655_s18   ;;  %s499_s17 = sphi %s543_s17, %s654_s17   ;;  %s495_s16 = sphi %s541_s16, %s653_s16   ;;  %s491_s15 = sphi %s539_s15, %s652_s15  }
   0x5   : > { %s29_s23 = sadd.s32 1, %s507_s19  ;;  %s136_s24 = sadd.s32 1, %s499_s17 }
   0x6   : > { %p31_p0 = scmp.ge.s32.totalorder %s29_s23, 2  ;;  %p146_p1 = scmp.ne.s32.totalorder %s499_s17, %s495_s16 }
   0x7   : > { %p147_p2 = scmp.eq.s32.totalorder %s364_s21, 1  ;;  %p152_p3 = scmp.ne.s32.totalorder %s495_s16, %s491_s15 }
   0x8   : > { %s658_s23 = smov (%p31_p0, %s29_s23), 0  ;;  %p153_p5 = scmp.eq.s32.totalorder %s365_s22, 1 }
   0x9   : > { %p579_p4 = por %p147_p2, %p146_p1  ;;  %s131_s26 = ssub.s32 %s507_s19, %s658_s23 }
   0xa   : > { %p368_p6 = scmp.ge.s32.totalorder %s511_s20, 1  ;;  %p134_p7 = scmp.eq.s32.totalorder %s131_s26, 0 }
   0xb   : > { %p586_p8 = por %p153_p5, %p152_p3  ;;  %p196_p9 = scmp.lt.s32.totalorder %s511_s20, 3 }
   0xc   : > { %s592_s28 = scalar_select %p134_p7, %s499_s17, %s136_s24  }
   0xd   : > { %p197_p10 = pnand %p368_p6, %p196_p9 }
   0xe   : > { %p230_p11 = scmp.lt.s32.totalorder (!%p197_p10), %s503_s18, 1  ;;  %s227_s12 = sand.u32 (!%p197_p10), 1, %s495_s16  }
   0xf   : > { %200 = sbr.rel (%p197_p10) target bundleno = 152 (0x98), region = 36  ;;  %s369_s22 = sshll.u32 (!%p197_p10), %s227_s12, 2 }
  0x10   : > { %s372_s24 = sshll.u32 (!%p197_p10), %s503_s18, 2  ;;  %s229_s6 = scalar_lea.vmem (!%p197_p10), [#allocation2], %s369_s22 }
  0x11   : > { %s276_s30 = scalar_lea.hbm (!%p197_p10), %s649_s4, %s372_s24  ;;  %s278_s7 = sshll.u32 (!%p197_p10), %s229_s6, 4  ;;  %s279_s7 = int_to_ptr.vmem [resolvable:$true] %s278_s7 }
  0x12   : > { %s265_s9 = scalar_lea.sflag (!%p197_p10), [#allocation3], %s227_s12 }
  0x14   : > { %v244_v0 = vld [vmem:[%s645_s0] sm:$0xf]  ;;  %v513_v1 = vmov 0   ;;  %s231_s5 = scalar_select %p230_p11, %s503_s18, 1 }
  0x15   : > { %431 = vset.pattern.permute.xlu0 %v513_v1  ;;  %v251_v2 = vld [vmem:[%s646_s1] sm:$0xf] }
  0x16   : > { %247 = vperm.xlu0 %431, %v244_v0   ;;  %s242_s8 = scalar_lea.vmem %s648_s3, %s231_s5  ;;  %s370_s11 = sshll.u32 %s231_s5, 2 }
  0x17   : > { %s236_s21 = scalar_lea.vmem %s647_s2, %s370_s11  ;;  %v432_v6 = vld [vmem:[%s242_s8] ss:$0 sm:$0xff]  ;;  %s280_s5 = sshll.u32 %s276_s30, 4  ;;  %s281_s5 = int_to_ptr.hbm [resolvable:$true] %s280_s5 }
  0x18   : > { %v243_v4 = vld [vmem:[%s236_s21] sm:$0xf]  ;;  %s447_s10 = sshra.s32 %s281_s5, 4  ;;  %s453_s8 = scalar_lea.hbm %s649_s4, 8  ;;  %s448_s10 = int_to_ptr.hbm [resolvable:$true] %s447_s10 }
  0x19   : > { %s449_s18 = scalar_lea.hbm %s448_s10, 4  ;;  %p454_p1 = scmp.lt.s32.totalorder %s448_s10, %s649_s4 }
  0x1a   : > { %p450_p12 = scmp.ne.s32.totalorder %s448_s10, %s449_s18  ;;  %p455_p2 = scmp.lt.s32.totalorder %s453_s8, %s449_s18 }
  0x1c   : > { %p451_p13 = pnand %p450_p12, %p579_p4  ;;  %p456_p3 = por %p455_p2, %p454_p1 }
  0x1e   : > { %254 = vperm.xlu0 %431, %v251_v2   ;;  %p452_p0 = pneg %p451_p13 }
  0x20   : > { %p457_p5 = pnand %p456_p3, %p452_p0 }
  0x88   : > { %v248_v3 = vpop.permute.xlu0 %247 }
  0x89   : > { %v250_v5 = vmul.f32 %v248_v3, %v243_v4 }
  0x90   : > { %v255_v7 = vpop.permute.xlu0 %254 }
  0x91   : > { %v257_v8 = vadd.f32 %v255_v7, %v250_v5 }
  0x93   : > { %v262_v9 = vmul.f32 %v432_v6, %v257_v8 }
  0x95   : > { %263 = vst [vmem:[%s229_s6] sm:$0xf] %v262_v9 }
  0x96   : > { %460 = shalt.err (!%p457_p5)
}
  0x97   : > { %375 = dma.vmem_to_hbm [thread:$0]  (%p579_p4), %s279_s7, 64, %s281_s5, %s265_s9  }
  0x98 PF: > { %p381_p6 = scmp.ge.s32.totalorder %s511_s20, 2  ;;  %s292_s12 = sand.u32 1, %s491_s15  }
  0x99   : > { %s293_s22 = scalar_lea.sflag [#allocation3], %s292_s12 }
  0x9a   : > { %p378_p7 = pnand %p381_p6, %p586_p8 }
  0x9c   : > { %p379_p9 = pneg %p378_p7 }
  0x9e   : > { %486 = dma.done.wait (%p379_p9), %s293_s22, 64  }
  0x9f   : > { %488 = vsyncadd (%p379_p9), %s293_s22, 4294967232  ;;  %s17_s20 = sadd.s32 1, %s511_s20   ;;  %s652_s15 = smov %s495_s16 }
  0xa0   : > { %p14_p10 = scmp.ge.s32.totalorder %s17_s20, 4   ;;  %s653_s16 = smov %s499_s17 }
  0xa1   : > { %s654_s17 = smov %s592_s28  ;;  %s655_s18 = smov %s507_s19 }
  0xa2   : > { %s656_s19 = smov %s658_s23  ;;  %16 = sbr.rel (!%p14_p10) target bundleno = 4 (0x4), region = 74 }
  0xa7   :  { %299 = vsyncpa [#allocation3], 1 }
  0xa8   :  { %301 = vsyncpa [#allocation3 + $0x1], 1 }

</bundles_post_ra>
